<compile_context>
chip_gen: v6e
topology: v6e:2x2x1
jax: 0.10.0
libtpu: 0.0.40
codegen_flags: <defaults>
</compile_context>

<pallas_src>
import math
from functools import partial

import jax
import jax.numpy as jnp
from jax.experimental import pallas as pl
from jax.experimental.pallas import tpu as pltpu


_FAST_PATH_BYTES = 2 << 20  # below this, XLA's fused broadcast-mul wins


def _round_up(x: int, m: int) -> int:
    return ((x + m - 1) // m) * m


def _sublane_pack(itemsize: int) -> int:
    # fully-packed sublane count: 8 rows (f32), 16 (bf16), 32 (int8)
    return max(8, 32 // max(itemsize, 1))


def _native_vpu_math(dtype) -> bool:
    """True if the multiply can stay in the input dtype (f32 anywhere,
    bf16 on v6e/v7x which have a native bf16 VALU)."""
    if jnp.dtype(dtype) == jnp.dtype(jnp.float32):
        return True
    try:
        kind = jax.devices()[0].device_kind.lower()
    except Exception:
        return False
    return not any(v in kind for v in ("v2", "v3", "v4", "v5"))


def _choose_layout(m: int, itemsize: int):
    """Pick (lane, rows) with lane % 128 == 0 and m == rows * lane.

    Returns None when m has no 128-multiple divisor (ragged case — handled by
    the plain-JAX fast path, never by pad+slice)."""
    sub = _sublane_pack(itemsize)
    divisors = [c for c in (512, 256, 128) if m % c == 0]
    if not divisors:
        return None
    # Prefer the widest lane whose row count is a multiple of `sub`
    # (every (8,128)/(16,128) vreg fully packed, all stores unmasked).
    for c in divisors:
        if (m // c) % sub == 0:
            return c, m // c
    # Ragged rows: prefer lane=128 so rows grows; the single masked boundary
    # block is then the smallest possible fraction of the work.
    c = divisors[-1]  # 128 always divides m if any candidate does
    return c, m // c


def _choose_row_tile(rows: int, lane: int, itemsize: int, batch: int) -> int:
    """~4 MiB row tiles; keep >= 2 row tiles when batch == 1 (v7x megacore)."""
    sub = _sublane_pack(itemsize)
    target_bytes = 4 << 20
    target_rows = max(sub, (target_bytes // (lane * itemsize)) // sub * sub)
    if batch == 1 and rows >= 2 * sub:
        target_rows = min(target_rows, max(sub, (rows // 2) // sub * sub))
    if rows <= target_rows:
        return rows
    # Prefer a tile that divides `rows` exactly (all stores unmasked).
    for cand in range(target_rows, sub - 1, -sub):
        if rows % cand == 0:
            return cand
    return target_rows  # masked boundary block: correct, slightly slower tail


def _drop_path_kernel(scale_ref, x_ref, o_ref, *, promote_f32: bool):
    """One grid step = one (sample, row-tile) block.

    scale_ref : SMEM (B,) float32 — per-sample mask_b / keep_prob
    x_ref     : VMEM (1, R_TILE, LANE) tile of sample b
    o_ref     : VMEM (1, R_TILE, LANE) output tile (aliased with x)
    """
    b = pl.program_id(0)
    s = scale_ref[b]  # f32 scalar read from SMEM
    if promote_f32:
        # v5e and older: no bf16 VALU — multiply in f32, round once.
        o_ref[...] = (x_ref[...].astype(jnp.float32) * s).astype(o_ref.dtype)
    else:
        # v6e/v7x (native bf16) or f32 input: single load -> mul -> store.
        o_ref[...] = x_ref[...] * s.astype(o_ref.dtype)


def drop_path(x, drop_prob: float = 0.0, training: bool = False, key=None,
              *, force_pallas: bool = False):
    """JAX/Pallas equivalent of the per-sample stochastic-depth op."""
    if drop_prob == 0.0 or not training:
        return x
    if key is None:
        raise ValueError("key must be provided when training with drop_prob > 0")

    keep_prob = 1.0 - drop_prob
    B = x.shape[0]

    # Per-sample random tensor, same recipe as torch: floor(keep_prob + U[0,1))
    u = jax.random.uniform(key, (B,), dtype=jnp.float32)
    mask = jnp.floor(keep_prob + u)                # 0.0 or 1.0 per sample
    scale = mask / jnp.float32(keep_prob)          # stays f32

    M = math.prod(x.shape[1:])
    itemsize = jnp.dtype(x.dtype).itemsize
    total_bytes = B * M * itemsize
    layout = _choose_layout(M, itemsize)

    # Fast path: tiny tensors (launch overhead dominates) or ragged feature
    # sizes (no 128-multiple divisor).  One fused broadcast multiply in XLA —
    # exactly 1 HBM read + 1 write, no pad/slice round trips.
    if layout is None or (total_bytes < _FAST_PATH_BYTES and not force_pallas):
        bshape = (B,) + (1,) * (x.ndim - 1)
        return (x.astype(jnp.float32) * scale.reshape(bshape)).astype(x.dtype)

    lane, rows = layout
    r_tile = _choose_row_tile(rows, lane, itemsize, B)
    num_row_tiles = pl.cdiv(rows, r_tile)

    x3 = x.reshape(B, rows, lane)
    promote_f32 = not _native_vpu_math(x.dtype)

    flops = B * rows * lane                        # one multiply per element
    bytes_accessed = 2 * total_bytes + B * 4       # pure memory-bound op

    out = pl.pallas_call(
        partial(_drop_path_kernel, promote_f32=promote_f32),
        out_shape=jax.ShapeDtypeStruct((B, rows, lane), x.dtype),
        grid=(B, num_row_tiles),
        in_specs=[
            pl.BlockSpec(memory_space=pltpu.MemorySpace.SMEM),        # scale (B,) f32
            pl.BlockSpec((1, r_tile, lane), lambda b, r: (b, r, 0)),  # x tile
        ],
        out_specs=pl.BlockSpec((1, r_tile, lane), lambda b, r: (b, r, 0)),
        input_output_aliases={1: 0},               # scale applied in place
        compiler_params=pltpu.CompilerParams(
            dimension_semantics=("parallel", "parallel"),
            vmem_limit_bytes=32 * 1024 * 1024,     # <=16 MiB live; safe on v7x
        ),
        cost_estimate=pl.CostEstimate(
            flops=flops, transcendentals=0, bytes_accessed=bytes_accessed),
    )(scale, x3)

    return out.reshape(x.shape)


class DropPath:
    """Drop paths (Stochastic Depth) per sample."""

    def __init__(self, drop_prob=None):
        self.drop_prob = drop_prob
        self.training = True

    def __call__(self, x, key=None, **kw):
        p = 0.0 if self.drop_prob is None else float(self.drop_prob)
        return drop_path(x, p, self.training, key=key, **kw)


if __name__ == "__main__":
    root = jax.random.PRNGKey(0)
    k_x, k_mask, k_big = jax.random.split(root, 3)

    drop_prob = 0.3
    keep_prob = 1.0 - drop_prob

    def ref_drop_path(x, key):
        b = x.shape[0]
        u = jax.random.uniform(key, (b,), dtype=jnp.float32)
        m = jnp.floor(keep_prob + u).reshape((b,) + (1,) * (x.ndim - 1))
        return (x.astype(jnp.float32) * (m / keep_prob)).astype(x.dtype)

    # 1) small f32 tensor; force the Pallas path (small sizes default to XLA).
    x = jax.random.normal(k_x, (2, 4, 16, 16), dtype=jnp.float32)
    module = DropPath(drop_prob=drop_prob)
    module.training = True
    y = jax.block_until_ready(module(x, key=k_mask, force_pallas=True))
    assert y.shape == x.shape and y.dtype == x.dtype
    assert jnp.allclose(y, ref_drop_path(x, k_mask), atol=1e-6, rtol=1e-6)

    # 2) bf16 tensor through the Pallas path (native bf16 math on v6e/v7x).
    xb = jax.random.normal(k_x, (2, 8, 16, 16), dtype=jnp.bfloat16)
    yb = jax.block_until_ready(drop_path(xb, drop_prob, True, key=k_mask,
                                         force_pallas=True))
    assert yb.shape == xb.shape and yb.dtype == xb.dtype
    assert jnp.allclose(yb.astype(jnp.float32),
                        ref_drop_path(xb, k_mask).astype(jnp.float32),
                        atol=2e-2, rtol=2e-2)

    # 3) larger tensor: auto-selected Pallas path with big (multi-MiB) blocks.
    xl = jax.random.normal(k_big, (2, 32, 128, 128), dtype=jnp.float32)
    yl = jax.block_until_ready(drop_path(xl, drop_prob, True, key=k_mask))
    assert jnp.allclose(yl, ref_drop_path(xl, k_mask), atol=1e-6, rtol=1e-6)

    # 4) batch == 1: row axis is split so the grid still has >= 2 steps.
    x1 = jax.random.normal(k_big, (1, 32, 128, 128), dtype=jnp.float32)
    y1 = jax.block_until_ready(drop_path(x1, drop_prob, True, key=k_mask,
                                         force_pallas=True))
    assert jnp.allclose(y1, ref_drop_path(x1, k_mask), atol=1e-6, rtol=1e-6)

    # 5) ragged feature size (M % 128 != 0): plain-JAX fused path, no pad/slice.
    xr = jax.random.normal(k_x, (2, 3, 10, 10), dtype=jnp.float32)
    yr = jax.block_until_ready(drop_path(xr, drop_prob, True, key=k_mask))
    assert yr.shape == xr.shape
    assert jnp.allclose(yr, ref_drop_path(xr, k_mask), atol=1e-6, rtol=1e-6)

    # 6) eval mode / drop_prob == 0 -> identity path (no kernel launch)
    module.training = False
    y_eval = jax.block_until_ready(module(x, key=k_mask))
    assert jnp.array_equal(y_eval, x)

    print("KERNEL_OK")
</pallas_src>

<mosaic_0001>
module attributes {stable_mosaic.version = 11 : i64} {
  func.func @_drop_path_kernel(%arg0: i32, %arg1: i32, %arg2: memref<2xf32, #tpu.memory_space<smem>>, %arg3: memref<1x8x128xf32, #tpu.memory_space<vmem>>, %arg4: memref<1x8x128xf32, #tpu.memory_space<vmem>>) attributes {dimension_semantics = [#tpu.dimension_semantics<parallel>, #tpu.dimension_semantics<parallel>], iteration_bounds = array<i64: 2, 1>, scalar_prefetch = 0 : i64, scratch_operands = 0 : i64, tpu.core_type = #tpu.core_type<tc>, window_params = [{transform_indices = @transform_0, window_bounds = array<i64: 2>}, {transform_indices = @transform_1, window_bounds = array<i64: 1, 8, 128>}, {transform_indices = @transform_2, window_bounds = array<i64: 1, 8, 128>}]} {
    %0 = arith.index_cast %arg0 : i32 to index
    %1 = memref.load %arg2[%0] : memref<2xf32, #tpu.memory_space<smem>>
    %c0 = arith.constant 0 : index
    %c0_0 = arith.constant 0 : index
    %c0_1 = arith.constant 0 : index
    %2 = vector.load %arg3[%c0, %c0_0, %c0_1] : memref<1x8x128xf32, #tpu.memory_space<vmem>>, vector<1x8x128xf32>
    %3 = vector.broadcast %1 : f32 to vector<1x8x128xf32>
    %4 = arith.mulf %2, %3 : vector<1x8x128xf32>
    %c0_2 = arith.constant 0 : index
    %c0_3 = arith.constant 0 : index
    %c0_4 = arith.constant 0 : index
    %5 = vector.load %arg4[%c0_2, %c0_3, %c0_4] : memref<1x8x128xf32, #tpu.memory_space<vmem>>, vector<1x8x128xf32>
    tpu.vector_store %arg4[%c0_2, %c0_3, %c0_4], %4 {strides = array<i32>} : memref<1x8x128xf32, #tpu.memory_space<vmem>>, vector<1x8x128xf32>,
    return
  }
  func.func @transform_0(%arg0: i32, %arg1: i32) -> i32 {
    %c0_i32 = arith.constant 0 : i32
    %c0_i32_0 = arith.constant 0 : i32
    return %c0_i32 : i32
  }
  func.func @transform_1(%arg0: i32, %arg1: i32) -> (i32, i32, i32) {
    %c0_i32 = arith.constant 0 : i32
    %c0_i32_0 = arith.constant 0 : i32
    return %arg0, %arg1, %c0_i32 : i32, i32, i32
  }
  func.func @transform_2(%arg0: i32, %arg1: i32) -> (i32, i32, i32) {
    %c0_i32 = arith.constant 0 : i32
    %c0_i32_0 = arith.constant 0 : i32
    return %arg0, %arg1, %c0_i32 : i32, i32, i32
  }
}

</mosaic_0001>

<bundles_post_ra>
// kernel: tpu_custom_call.1
= control target key start
LH: loop header
LB: loop body
LE: loop exit
PB: predicated region body
PF: predicated region fallthrough
CT: control target
= control target key end

     0   :  { %7 = vsyncpa [#allocation5], 0  ;;  %s699_s0 = inlined_call_operand.vmem [shape: f32[2], index: 0, kind: input, shape index: {}]   ;;  %s700_s1 = inlined_call_operand.hbm [shape: f32[2,8,128], index: 1, kind: input, shape index: {}, may-alias: {1,2}]   ;;  %s701_s2 = inlined_call_operand.hbm [shape: f32[2,8,128], index: 2, kind: output, shape index: {}, may-alias: {1,2}]  }
   0x1   :  { %8 = vsyncpa [#allocation3], 0 }
   0x2   :  { %10 = vsyncpa [#allocation3 + $0x1], 0 }
   0x3   :  { %11 = vsyncpa [#allocation4], 0 }
   0x4   :  { %13 = vsyncpa [#allocation4 + $0x1], 0  ;;  %s537_s9 = smov 0   ;;  %s539_s10 = smov 0  }
   0x5   :  { %s541_s11 = smov 0   ;;  %s543_s12 = smov 0  }
   0x6   :  { %s545_s13 = smov 0   ;;  %s547_s14 = smov 0  }
   0x7 LB: > { %s302_s15 = sadd.s32 4294967295, %s517_s14   ;;  %s303_s16 = sadd.s32 4294967294, %s517_s14   ;;  %s517_s14 = sphi %s547_s14, %s19_s14   ;;  %s513_s13 = sphi %s545_s13, %s718_s13   ;;  %s509_s12 = sphi %s543_s12, %s717_s12   ;;  %s505_s11 = sphi %s541_s11, %s716_s11   ;;  %s501_s10 = sphi %s539_s10, %s715_s10   ;;  %s497_s9 = sphi %s537_s9, %s714_s9  }
   0x8   : > { %p74_p0 = scmp.ne.s32.totalorder %s501_s10, %s497_s9  ;;  %p571_p1 = scmp.eq.s32.totalorder %s302_s15, 0 }
   0x9   : > { %p575_p2 = scmp.eq.s32.totalorder %s302_s15, 1  ;;  %p106_p3 = scmp.eq.s32.totalorder %s303_s16, 1 }
   0xa   : > { %p581_p4 = por %p571_p1, %p74_p0  ;;  %p304_p5 = scmp.ge.s32.totalorder %s517_s14, 1 }
   0xb   : > { %p586_p6 = por %p106_p3, %p74_p0  ;;  %p113_p7 = scmp.lt.s32.totalorder %s517_s14, 3 }
   0xc   : > { %s705_s19 = scalar_select %p581_p4, 1, 0 }
   0xd   : > { %s706_s20 = scalar_select %p586_p6, 1, 0 }
   0xe   : > { %s126_s23 = sshll.u32 %s699_s0, 4  ;;  %p594_p8 = pnand %p304_p5, %p113_p7  ;;  %s127_s23 = int_to_ptr.vmem [resolvable:$true] %s126_s23 }
   0xf   : > { %s31_s26 = sadd.s32 1, %s513_s13  ;;  %s61_s27 = sadd.s32 1, %s505_s11 }
  0x10   : > { %p325_p10 = pneg %p594_p8  ;;  %p33_p12 = scmp.ge.s32.totalorder %s31_s26, 2 }
  0x11   : > { %s390_s28 = scalar_lea.vmem %s127_s23, 16  ;;  %p398_p7 = scmp.lt.s32.totalorder %s127_s23, %s127_s23 }
  0x12   : > { %p603_p11 = pnand %p325_p10, %p571_p1  ;;  %p391_p13 = scmp.ne.s32.totalorder %s127_s23, %s390_s28 }
  0x13   : > { %p399_p6 = scmp.lt.s32.totalorder %s390_s28, %s390_s28 }
  0x14   : > { %p392_p0 = pneg %p603_p11 }
  0x15   : > { %p400_p9 = por %p399_p6, %p398_p7 }
  0x16   : > { %p393_p3 = pnand %p392_p0, %p391_p13 }
  0x18   : > { %p394_p5 = pneg %p393_p3 }
  0x1a   : > { %p401_p4 = pnand %p400_p9, %p394_p5 }
  0x1c   : > { %404 = shalt.err (!%p401_p4)
}
  0x1d   : > { %s519_s29 = smov [#allocation2]   ;;  %s720_s26 = smov (%p33_p12, %s31_s26), 0 }
  0x1e   : > { %328 = dma.vmem_to_smem (!%p603_p11), %s127_s23, 16, %s519_s29, [#allocation5]  }
  0x1f   : > { %p68_p10 = scmp.ne.s32.totalorder %s505_s11, %s501_s10  ;;  %p69_p6 = scmp.eq.s32.totalorder %s517_s14, 0 }
  0x20   : > { %s56_s30 = ssub.s32 %s513_s13, %s720_s26  ;;  %p338_p4 = scmp.lt.s32.totalorder %s517_s14, 2 }
  0x21   : > { %p59_p9 = scmp.eq.s32.totalorder %s56_s30, 0  ;;  %p70_p13 = por %p69_p6, %p68_p10 }
  0x22   : > { %p623_p0 = por %p575_p2, %p68_p10  ;;  %s137_s4 = sand.u32 1, %s505_s11  }
  0x23   : > { %s629_s5 = scalar_select %p59_p9, %s505_s11, %s61_s27  }
  0x24   : > { %s307_s6 = sshll.u32 %s137_s4, 3  ;;  %s308_s7 = sshll.u32 %s513_s13, 7 }
  0x25   : > { %s147_s16 = scalar_lea.hbm %s700_s1, %s308_s7  ;;  %s141_s21 = scalar_lea.vmem [#allocation6], %s307_s6 }
  0x26   : > { %s149_s22 = sshll.u32 %s141_s21, 4  ;;  %p635_p11 = pnand %p338_p4, %p70_p13  ;;  %s150_s22 = int_to_ptr.vmem [resolvable:$true] %s149_s22 }
  0x27   : > { %s138_s18 = scalar_lea.sflag [#allocation3], %s137_s4  ;;  %s418_s25 = scalar_lea.vmem %s150_s22, 128 }
  0x28   : > { %p407_p2 = pneg %p635_p11  ;;  %p419_p12 = scmp.ne.s32.totalorder %s150_s22, %s418_s25 }
  0x29   : > { %s520_s27 = smov [#allocation6]  }
  0x2a   : > { %p421_p3 = pnand %p419_p12, %p407_p2  ;;  %s423_s28 = sshll.u32 %s520_s27, 4  ;;  %s424_s28 = int_to_ptr.vmem [resolvable:$false] %s423_s28 }
  0x2b   : > { %s425_s29 = scalar_lea.vmem %s424_s28, 256  ;;  %p426_p7 = scmp.lt.s32.totalorder %s150_s22, %s424_s28 }
  0x2c   : > { %p422_p5 = pneg %p421_p3  ;;  %p427_p10 = scmp.lt.s32.totalorder %s425_s29, %s418_s25 }
  0x2e   : > { %p428_p6 = por %p427_p10, %p426_p7 }
  0x30   : > { %p429_p9 = pnand %p428_p6, %p422_p5 }
  0x32   : > { %432 = shalt.err (!%p429_p9)
}
  0x33   : > { %332 = dma.hbm_to_vmem [thread:$0]  (!%p635_p11), %s147_s16, 128, %s150_s22, %s138_s18  }
  0x34   : > { %158 = sbr.rel (%p594_p8) target bundleno = 88 (0x58), region = 28 }
  0x39   : > { %484 = dma.done.wait (%p571_p1), [#allocation5], 16  }
  0x3a   : > { %486 = vsyncadd (%p571_p1), [#allocation5], 4294967280  ;;  %s650_s30 = sand.u32 1, %s501_s10   ;;  %p711_p4 = scmp.ne.s32.totalorder %s705_s19, 0 }
  0x3b   : > { %s311_s4 = sshll.u32 %s650_s30, 3  ;;  %s165_s6 = scalar_lea.sflag [#allocation3], %s650_s30 }
  0x3c   : > { %s168_s7 = scalar_lea.vmem [#allocation6], %s311_s4 }
  0x3d   : > { %488 = dma.done.wait (%p711_p4), %s165_s6, 128  }
  0x3e   : > { %490 = vsyncadd (%p711_p4), %s165_s6, 4294967168 }
  0x3f   : > { %173 = sfence }
  0x40   : > { %s190_s17 = sld [smem:[#allocation2 + %s509_s12]]  ;;  %v191_v0 = vld [vmem:[%s168_s7] sm:$0xff]  ;;  %s189_s24 = scalar_lea.vmem [#allocation7], %s311_s4 }
  0x41   : > { %s210_s8 = sshll.u32 %s189_s24, 4  ;;  %s314_s15 = sshll.u32 %s509_s12, 7  ;;  %s211_s8 = int_to_ptr.vmem [resolvable:$true] %s210_s8 }
  0x42   : > { %s208_s22 = scalar_lea.hbm %s701_s2, %s314_s15  ;;  %s196_s19 = scalar_lea.sflag [#allocation4], %s650_s30 }
  0x43   : > { %s433_s23 = scalar_lea.vmem %s211_s8, 128  ;;  %s521_s18 = smov [#allocation7]  }
  0x44   : > { %p434_p1 = scmp.ne.s32.totalorder %s211_s8, %s433_s23  ;;  %s437_s25 = sshll.u32 %s521_s18, 4  ;;  %s438_s25 = int_to_ptr.vmem [resolvable:$false] %s437_s25 }
  0x45   : > { %s439_s27 = scalar_lea.vmem %s438_s25, 256  ;;  %p440_p11 = scmp.lt.s32.totalorder %s211_s8, %s438_s25 }
  0x46   : > { %v192_v1 = vstv %s190_s17  ;;  %p435_p8 = pnand %p434_p1, %p623_p0  ;;  %p441_p2 = scmp.lt.s32.totalorder %s439_s27, %s433_s23 }
  0x47   : > { %v193_v2 = vmul.f32 %v192_v1, %v191_v0 }
  0x48   : > { %p436_p13 = pneg %p435_p8  ;;  %p442_p12 = por %p441_p2, %p440_p11 }
  0x49   : > { %194 = vst [vmem:[%s189_s24] sm:$0xff] %v193_v2 }
  0x4a   : > { %p443_p3 = pnand %p442_p12, %p436_p13 }
  0x4c   : > { %446 = shalt.err (!%p443_p3)
}
  0x4d   : > { %s447_s12 = scalar_lea.hbm %s208_s22, 128  ;;  %s451_s30 = scalar_lea.hbm %s701_s2, 256 }
  0x4e   : > { %p448_p5 = scmp.ne.s32.totalorder %s208_s22, %s447_s12  ;;  %p452_p6 = scmp.lt.s32.totalorder %s208_s22, %s701_s2 }
  0x4f   : > { %p453_p9 = scmp.lt.s32.totalorder %s451_s30, %s447_s12 }
  0x50   : > { %p449_p7 = pnand %p448_p5, %p623_p0 }
  0x51   : > { %p454_p4 = por %p453_p9, %p452_p6 }
  0x52   : > { %p450_p10 = pneg %p449_p7 }
  0x54   : > { %p455_p1 = pnand %p454_p4, %p450_p10 }
  0x56   : > { %458 = shalt.err (!%p455_p1)
}
  0x57   : > { %323 = dma.vmem_to_hbm [thread:$0]  (%p623_p0), %s211_s8, 128, %s208_s22, %s196_s19  }
  0x58 PF: > { %s222_s7 = sand.u32 1, %s497_s9   ;;  %p712_p8 = scmp.ne.s32.totalorder %s706_s20, 0 }
  0x59   : > { %p713_p13 = scmp.ge.s32.totalorder %s517_s14, 2  ;;  %s223_s17 = scalar_lea.sflag [#allocation4], %s222_s7 }
  0x5b   : > { %p334_p11 = pnand %p713_p13, %p712_p8 }
  0x5d   : > { %p335_p2 = pneg %p334_p11 }
  0x5f   : > { %492 = dma.done.wait (%p335_p2), %s223_s17, 128  }
  0x60   : > { %494 = vsyncadd (%p335_p2), %s223_s17, 4294967168  ;;  %s19_s14 = sadd.s32 1, %s517_s14   ;;  %s714_s9 = smov %s501_s10 }
  0x61   : > { %p16_p12 = scmp.ge.s32.totalorder %s19_s14, 4   ;;  %s715_s10 = smov %s505_s11 }
  0x62   : > { %s716_s11 = smov %s629_s5  ;;  %s717_s12 = smov %s513_s13 }
  0x63   : > { %s718_s13 = smov %s720_s26  ;;  %18 = sbr.rel (!%p16_p12) target bundleno = 7 (0x7), region = 78 }
  0x68   :  { %228 = vsyncpa [#allocation3], 1 }
  0x69   :  { %230 = vsyncpa [#allocation3 + $0x1], 1 }
  0x6a   :  { %231 = vsyncpa [#allocation4], 1 }
  0x6b   :  { %233 = vsyncpa [#allocation4 + $0x1], 1 }
  0x6c   :  { %234 = vsyncpa [#allocation5], 1 }
  0x6d   :  { %236 = vsyncpa [#allocation5 + $0x1], 1 }

</bundles_post_ra>
